<compile_context>
chip_gen: v5e
topology: v5e:2x2
jax: 0.10.0
libtpu: 0.0.40
codegen_flags: <defaults>
</compile_context>

<pallas_src>
import jax
import jax.numpy as jnp
from jax.experimental import pallas as pl
from jax.experimental.pallas import tpu as pltpu


def _cross_entropy_kernel(logits_ref, labels_ref, sum_ref, cnt_ref):
    # logits_ref: (TILE_N, C) input dtype; labels_ref: (TILE_N, 1) int32
    # sum_ref / cnt_ref: (1, 1, 128) f32 lane-dense per-tile partials.
    logits = logits_ref[...].astype(jnp.float32)          # (TILE_N, C)
    labels = labels_ref[...]                               # (TILE_N, 1) int32
    tn, c = logits.shape

    # Valid rows: in-range labels. Handles torch ignore_index=-100 and any
    # batch padding rows (labelled -100 by the wrapper).
    valid = jnp.logical_and(labels >= 0, labels < c)        # (TILE_N, 1) bool

    # Numerically-stable logsumexp per row.
    row_max = jnp.max(logits, axis=-1, keepdims=True)       # (TILE_N, 1)
    shifted = logits - row_max
    lse = row_max + jnp.log(jnp.sum(jnp.exp(shifted), axis=-1, keepdims=True))

    # Gather target logit with an iota == label mask (no dynamic gather).
    class_ids = jax.lax.broadcasted_iota(jnp.int32, (tn, c), 1)
    target_mask = class_ids == labels                        # (TILE_N, C)
    target_logit = jnp.sum(jnp.where(target_mask, logits, 0.0),
                           axis=-1, keepdims=True)           # (TILE_N, 1)

    per_row = jnp.where(valid, lse - target_logit, 0.0)      # -log p(target)

    tile_sum = jnp.sum(per_row)
    tile_cnt = jnp.sum(valid.astype(jnp.float32))

    # Lane-dense unmasked stores (avoid 1-lane masked vst per step).
    sum_ref[...] = jnp.full(sum_ref.shape, tile_sum, dtype=jnp.float32)
    cnt_ref[...] = jnp.full(cnt_ref.shape, tile_cnt, dtype=jnp.float32)


def _round_up(x, m):
    return ((x + m - 1) // m) * m


def _choose_tile_n(n, c, itemsize):
    """Largest batch tile that keeps the per-step working set VMEM-safe
    across v5e/v6e/v7x (double-buffered input tile + f32/iota/mask temps)."""
    min_rows = 8 if itemsize >= 4 else 16   # (8,128) f32 / (16,128) bf16 tiling
    budget_bytes = 2 * 1024 * 1024          # ~2 MiB per logits tile buffer
    rows = max(min_rows, budget_bytes // max(1, c * itemsize))
    rows = max(min_rows, (rows // min_rows) * min_rows)
    rows = min(rows, 2048)                  # cap iota/mask temp size
    rows = min(rows, _round_up(n, min_rows))
    return rows


def class_loss(chat, c, split="train"):
    """Equivalent of ClassLoss.forward: returns (loss, log_dict).

    chat: (N, C) logits (f32 or bf16); c: (N,) integer class labels
    (label == -100 is ignored, matching torch nn.CrossEntropyLoss default).
    """
    n, num_classes = chat.shape
    itemsize = jnp.dtype(chat.dtype).itemsize
    tile_n = _choose_tile_n(n, num_classes, itemsize)
    n_pad = _round_up(n, tile_n)
    num_tiles = n_pad // tile_n

    labels = c.astype(jnp.int32).reshape(n, 1)
    if n_pad != n:
        chat = jnp.pad(chat, ((0, n_pad - n), (0, 0)))
        labels = jnp.pad(labels, ((0, n_pad - n), (0, 0)), constant_values=-100)

    partial_sums, partial_cnts = pl.pallas_call(
        _cross_entropy_kernel,
        out_shape=(
            jax.ShapeDtypeStruct((num_tiles, 1, 128), jnp.float32),
            jax.ShapeDtypeStruct((num_tiles, 1, 128), jnp.float32),
        ),
        grid=(num_tiles,),
        in_specs=[
            pl.BlockSpec((tile_n, num_classes), lambda i: (i, 0)),
            pl.BlockSpec((tile_n, 1), lambda i: (i, 0)),
        ],
        out_specs=(
            pl.BlockSpec((1, 1, 128), lambda i: (i, 0, 0)),
            pl.BlockSpec((1, 1, 128), lambda i: (i, 0, 0)),
        ),
        compiler_params=pltpu.CompilerParams(
            dimension_semantics=("parallel",),
            vmem_limit_bytes=32 * 1024 * 1024,
        ),
    )(chat, labels)

    total = jnp.sum(partial_sums[:, 0, 0])
    count = jnp.sum(partial_cnts[:, 0, 0])
    # Mean over non-ignored targets (torch CrossEntropyLoss 'mean' semantics).
    loss_val = total / count
    log = {f"{split}/clloss": loss_val}
    return loss_val, log


if __name__ == "__main__":
    key = jax.random.PRNGKey(0)
    k_logits, k_labels = jax.random.split(key)

    N, C = 8, 16  # small batch of 8 samples, 16 classes
    chat = jax.random.normal(k_logits, (N, C), dtype=jnp.float32)
    c = jax.random.randint(k_labels, (N,), 0, C, dtype=jnp.int32)

    loss_val, log = class_loss(chat, c, split="train")
    jax.block_until_ready(loss_val)

    # Pure-JAX reference (same math as torch CE with mean reduction).
    per_row_ref = (
        jax.nn.logsumexp(chat, axis=-1)
        - jnp.take_along_axis(chat, c[:, None], axis=-1)[:, 0]
    )
    ref = jnp.mean(per_row_ref)
    assert jnp.allclose(loss_val, ref, atol=1e-5, rtol=1e-5), (loss_val, ref)

    # Check ignore_index=-100 handling (torch default): ignored rows excluded
    # from both numerator and denominator.
    c_ign = c.at[0].set(-100)
    loss_ign, _ = class_loss(chat, c_ign, split="train")
    jax.block_until_ready(loss_ign)
    safe_idx = jnp.clip(c_ign, 0, C - 1)
    per_row2 = (
        jax.nn.logsumexp(chat, axis=-1)
        - jnp.take_along_axis(chat, safe_idx[:, None], axis=-1)[:, 0]
    )
    mask = (c_ign != -100).astype(jnp.float32)
    ref_ign = jnp.sum(per_row2 * mask) / jnp.sum(mask)
    assert jnp.allclose(loss_ign, ref_ign, atol=1e-5, rtol=1e-5), (loss_ign, ref_ign)

    print("KERNEL_OK")
</pallas_src>

<mosaic_0001>
module attributes {stable_mosaic.version = 11 : i64} {
  func.func @_cross_entropy_kernel(%arg0: i32, %arg1: memref<8x16xf32, #tpu.memory_space<vmem>>, %arg2: memref<8x1xi32, #tpu.memory_space<vmem>>, %arg3: memref<1x1x128xf32, #tpu.memory_space<vmem>>, %arg4: memref<1x1x128xf32, #tpu.memory_space<vmem>>) attributes {dimension_semantics = [#tpu.dimension_semantics<parallel>], iteration_bounds = array<i64: 1>, scalar_prefetch = 0 : i64, scratch_operands = 0 : i64, tpu.core_type = #tpu.core_type<tc>, window_params = [{transform_indices = @transform_0, window_bounds = array<i64: 8, 16>}, {transform_indices = @transform_1, window_bounds = array<i64: 8, 1>}, {transform_indices = @transform_2, window_bounds = array<i64: 1, 1, 128>}, {transform_indices = @transform_3, window_bounds = array<i64: 1, 1, 128>}]} {
    %c0 = arith.constant 0 : index
    %c0_0 = arith.constant 0 : index
    %0 = vector.load %arg1[%c0, %c0_0] : memref<8x16xf32, #tpu.memory_space<vmem>>, vector<8x16xf32>
    %c0_1 = arith.constant 0 : index
    %c0_2 = arith.constant 0 : index
    %1 = vector.load %arg2[%c0_1, %c0_2] : memref<8x1xi32, #tpu.memory_space<vmem>>, vector<8x1xi32>
    %c0_i32 = arith.constant 0 : i32
    %2 = vector.broadcast %c0_i32 : i32 to vector<8x1xi32>
    %3 = arith.cmpi sge, %1, %2 : vector<8x1xi32>
    %c16_i32 = arith.constant 16 : i32
    %4 = vector.broadcast %c16_i32 : i32 to vector<8x1xi32>
    %5 = arith.cmpi slt, %1, %4 : vector<8x1xi32>
    %6 = arith.andi %3, %5 : vector<8x1xi1>
    %cst = arith.constant dense<0xFF800000> : vector<8xf32>
    %7 = vector.multi_reduction <maximumf>, %0, %cst [1] : vector<8x16xf32> to vector<8xf32>
    %8 = vector.shape_cast %7 : vector<8xf32> to vector<8x1xf32>
    %9 = vector.broadcast %8 : vector<8x1xf32> to vector<8x16xf32>
    %10 = arith.subf %0, %9 : vector<8x16xf32>
    %11 = math.exp %10 : vector<8x16xf32>
    %cst_3 = arith.constant dense<0.000000e+00> : vector<8xf32>
    %12 = vector.multi_reduction <add>, %11, %cst_3 [1] : vector<8x16xf32> to vector<8xf32>
    %13 = vector.shape_cast %12 : vector<8xf32> to vector<8x1xf32>
    %14 = math.log %13 : vector<8x1xf32>
    %15 = arith.addf %8, %14 : vector<8x1xf32>
    %16 = tpu.iota {dimensions = array<i32: 1>} : vector<8x16xi32>
    %17 = vector.broadcast %1 : vector<8x1xi32> to vector<8x16xi32>
    %18 = arith.cmpi eq, %16, %17 : vector<8x16xi32>
    %cst_4 = arith.constant 0.000000e+00 : f32
    %19 = vector.broadcast %cst_4 : f32 to vector<8x16xf32>
    %20 = arith.select %18, %0, %19 : vector<8x16xi1>, vector<8x16xf32>
    %cst_5 = arith.constant dense<0.000000e+00> : vector<8xf32>
    %21 = vector.multi_reduction <add>, %20, %cst_5 [1] : vector<8x16xf32> to vector<8xf32>
    %22 = vector.shape_cast %21 : vector<8xf32> to vector<8x1xf32>
    %23 = arith.subf %15, %22 : vector<8x1xf32>
    %cst_6 = arith.constant 0.000000e+00 : f32
    %24 = vector.broadcast %cst_6 : f32 to vector<8x1xf32>
    %25 = arith.select %6, %23, %24 : vector<8x1xi1>, vector<8x1xf32>
    %26 = vector.shape_cast %25 : vector<8x1xf32> to vector<1x8x1xf32>
    %cst_7 = arith.constant dense<0.000000e+00> : vector<1xf32>
    %27 = vector.multi_reduction <add>, %26, %cst_7 [1, 2] : vector<1x8x1xf32> to vector<1xf32>
    %28 = vector.shape_cast %27 : vector<1xf32> to vector<1x1x1xf32>
    %29 = vector.extract %28[0, 0, 0] : f32 from vector<1x1x1xf32>
    %30 = arith.extui %6 : vector<8x1xi1> to vector<8x1xi32>
    %31 = arith.sitofp %30 : vector<8x1xi32> to vector<8x1xf32>
    %32 = vector.shape_cast %31 : vector<8x1xf32> to vector<1x8x1xf32>
    %cst_8 = arith.constant dense<0.000000e+00> : vector<1xf32>
    %33 = vector.multi_reduction <add>, %32, %cst_8 [1, 2] : vector<1x8x1xf32> to vector<1xf32>
    %34 = vector.shape_cast %33 : vector<1xf32> to vector<1x1x1xf32>
    %35 = vector.extract %34[0, 0, 0] : f32 from vector<1x1x1xf32>
    %36 = vector.broadcast %29 : f32 to vector<1x1x128xf32>
    %c0_9 = arith.constant 0 : index
    %c0_10 = arith.constant 0 : index
    %c0_11 = arith.constant 0 : index
    %37 = vector.load %arg3[%c0_9, %c0_10, %c0_11] : memref<1x1x128xf32, #tpu.memory_space<vmem>>, vector<1x1x128xf32>
    tpu.vector_store %arg3[%c0_9, %c0_10, %c0_11], %36 {strides = array<i32>} : memref<1x1x128xf32, #tpu.memory_space<vmem>>, vector<1x1x128xf32>,
    %38 = vector.broadcast %35 : f32 to vector<1x1x128xf32>
    %c0_12 = arith.constant 0 : index
    %c0_13 = arith.constant 0 : index
    %c0_14 = arith.constant 0 : index
    %39 = vector.load %arg4[%c0_12, %c0_13, %c0_14] : memref<1x1x128xf32, #tpu.memory_space<vmem>>, vector<1x1x128xf32>
    tpu.vector_store %arg4[%c0_12, %c0_13, %c0_14], %38 {strides = array<i32>} : memref<1x1x128xf32, #tpu.memory_space<vmem>>, vector<1x1x128xf32>,
    return
  }
  func.func @transform_0(%arg0: i32) -> (i32, i32) {
    %c0_i32 = arith.constant 0 : i32
    %c0_i32_0 = arith.constant 0 : i32
    return %arg0, %c0_i32 : i32, i32
  }
  func.func @transform_1(%arg0: i32) -> (i32, i32) {
    %c0_i32 = arith.constant 0 : i32
    %c0_i32_0 = arith.constant 0 : i32
    return %arg0, %c0_i32 : i32, i32
  }
  func.func @transform_2(%arg0: i32) -> (i32, i32, i32) {
    %c0_i32 = arith.constant 0 : i32
    %c0_i32_0 = arith.constant 0 : i32
    %c0_i32_1 = arith.constant 0 : i32
    return %arg0, %c0_i32, %c0_i32_0 : i32, i32, i32
  }
  func.func @transform_3(%arg0: i32) -> (i32, i32, i32) {
    %c0_i32 = arith.constant 0 : i32
    %c0_i32_0 = arith.constant 0 : i32
    %c0_i32_1 = arith.constant 0 : i32
    return %arg0, %c0_i32, %c0_i32_0 : i32, i32, i32
  }
}

</mosaic_0001>

<bundles_post_ra>
// kernel: tpu_custom_call.1
= control target key start
LH: loop header
LB: loop body
LE: loop exit
PB: predicated region body
PF: predicated region fallthrough
CT: control target
= control target key end

     0   :  { %9 = vsyncpa [#allocation3], 0  ;;  %vm20_vm0 = vcmask 130048   ;;  %s209_s0 = inlined_call_operand.vmem [shape: f32[8,16], index: 0, kind: input, shape index: {}]   ;;  %s210_s1 = inlined_call_operand.vmem [shape: s32[8,1], index: 1, kind: input, shape index: {}]   ;;  %s211_s2 = inlined_call_operand.hbm [shape: f32[1,1,128], index: 2, kind: output, shape index: {0}]   ;;  %s212_s3 = inlined_call_operand.hbm [shape: f32[1,1,128], index: 3, kind: output, shape index: {1}]  }
   0x1   :  { %v15_v0 = vld [vmem:[%s209_s0] sm:$0xff] }
   0x2   :  { %10 = vsyncpa [#allocation5], 0  ;;  %v21_v1 = vsel %vm20_vm0, %v15_v0, -inf  ;;  %v170_v2 = vmov 0   ;;  %v16_v3 = vld [vmem:[%s210_s1] sm:$0xff]  ;;  %v33_v9 = vlaneseq  ;;  %vm45_vm5 = vcmask 7168  }
   0x3   :  { %113 = vset.pattern.permute.xlu0 %v170_v2  ;;  %vm17_vm2 = vcmp.ge.s32.totalorder %v16_v3, 0  ;;  %vm18_vm3 = vcmp.lt.s32.totalorder %v16_v3, 16  ;;  %v171_v22 = vmov 0.0   ;;  %s172_s0 = smov [#allocation2]   ;;  %s79_s18 = sshll.u32 %s211_s2, 4  ;;  %s80_s18 = int_to_ptr.hbm [resolvable:$true] %s79_s18 }
   0x4   :  { %22 = vmax.xlane.f32.xlu0 %v21_v1  ;;  %v34_v10 = vand.u32 127, %v33_v9  ;;  %vm19_vm4 = vmand %vm17_vm2, %vm18_vm3  ;;  %s77_s1 = sshll.u32 %s172_s0, 4  ;;  %s173_s20 = smov [#allocation4]   ;;  %s78_s1 = int_to_ptr.vmem [resolvable:$true] %s77_s1 }
   0x5   :  { %v104_v23 = vsel %vm19_vm4, 1.0, %v171_v22  ;;  %s88_s21 = sshll.u32 %s173_s20, 4  ;;  %s90_s24 = sshll.u32 %s212_s3, 4  ;;  %s89_s21 = int_to_ptr.vmem [resolvable:$true] %s88_s21  ;;  %s91_s24 = int_to_ptr.hbm [resolvable:$true] %s90_s24 }
   0x6   :  { %v58_v24 = vsel %vm45_vm5, %v104_v23, 0.0 }
  0x18   :  { %36 = vperm.xlu0 %113, %v16_v3  }
  0x77   :  { %v23_v4 = vpop.xlane.xlu0 %22 }
  0x78   :  { %v24_v5 = vsub.f32 %v15_v0, %v23_v4 }
  0x7a   :  { %v25_v6 = vmul.f32 1.442695, %v24_v5 }
  0x7c   :  { %114 = vpow2.f32 %v25_v6 }
  0x82   :  { %v115_v7 = vpop.eup %114 }
  0x83   :  { %v27_v8 = vsel %vm20_vm0, %v115_v7, 0.0 }
  0x84   :  { %28 = vadd.xlane.f32.xlu1 %v27_v8 }
  0x8a   :  { %v37_v11 = vpop.permute.xlu0 %36 }
  0x8b   :  { %vm38_vm1 = vcmp.eq.s32.totalorder %v34_v10, %v37_v11 }
  0x8c   :  { %v39_v12 = vsel %vm38_vm1, %v15_v0, 0.0 }
  0x8d   :  { %v40_v13 = vsel %vm20_vm0, %v39_v12, 0.0 }
  0x8e   :  { %41 = vadd.xlane.f32.xlu1 %v40_v13 }
  0xf7   :  { %v29_v14 = vpop.xlane.xlu1 %28 }
  0xf8   :  { %116 = vlog2.f32 %v29_v14 }
  0xfe   :  { %v117_v15 = vpop.eup %116 }
  0xff   :  { %v31_v16 = vmul.f32 0.6931472, %v117_v15 }
 0x101   :  { %v32_v17 = vadd.f32 %v31_v16, %v23_v4  ;;  %v42_v18 = vpop.xlane.xlu1 %41 }
 0x103   :  { %v43_v19 = vsub.f32 %v32_v17, %v42_v18 }
 0x105   :  { %v44_v20 = vsel %vm19_vm4, %v43_v19, 0.0 }
 0x106   :  { %v46_v21 = vsel %vm45_vm5, %v44_v20, 0.0 }
 0x107   :  { %47 = vadd.xlane.f32.xlu2 %v46_v21 }
 0x10f   :  { %59 = vadd.xlane.f32.xlu2 %v58_v24 }
 0x17a   :  { %v48_v25 = vpop.xlane.xlu2 %47 }
 0x17b   :  { %v49_v26 = vrot.slane %v48_v25, 4 }
 0x17d   :  { %v50_v27 = vadd.f32 %v49_v26, %v48_v25 }
 0x17f   :  { %v51_v28 = vrot.slane %v50_v27, 2 }
 0x181   :  { %v52_v29 = vadd.f32 %v51_v28, %v50_v27 }
 0x182   :  { %v60_v30 = vpop.xlane.xlu2 %59 }
 0x183   :  { %v61_v31 = vrot.slane %v60_v30, 4  ;;  %v53_v32 = vrot.slane %v52_v29, 1 }
 0x185   :  { %v62_v33 = vadd.f32 %v61_v31, %v60_v30  ;;  %v54_v34 = vadd.f32 %v53_v32, %v52_v29 }
 0x187   :  { %v63_v35 = vrot.slane %v62_v33, 2  ;;  %105 = vpush %v54_v34 }
 0x189   :  { %v64_v36 = vadd.f32 %v63_v35, %v62_v33 }
 0x18b   :  { %v65_v37 = vrot.slane %v64_v36, 1 }
 0x18d   :  { %v66_v38 = vadd.f32 %v65_v37, %v64_v36 }
 0x18f   :  { %107 = vpush %v66_v38 }
 0x1b8   :  { %s106_s19 = spop %105 }
 0x1b9   :  { %v68_v39 = vstv %s106_s19 }
 0x1ba   :  { %69 = vst [vmem:[#allocation2] sm:$0x1] %v68_v39 }
 0x1bb   :  { %82 = dma.vmem_to_hbm [thread:$0]  %s78_s1, 16, %s80_s18, [#allocation3]  }
 0x1c0   :  { %s108_s25 = spop %107 }
 0x1c1   :  { %v70_v40 = vstv %s108_s25 }
 0x1c2   :  { %71 = vst [vmem:[#allocation4] sm:$0x1] %v70_v40 }
 0x1c3   :  { %93 = dma.vmem_to_hbm [thread:$0]  %s89_s21, 16, %s91_s24, [#allocation5]  }
 0x1c4   :  { %166 = dma.done.wait [#allocation3], 16  }
 0x1c5   :  { %167 = vsyncadd [#allocation3], 4294967280 }
 0x1c6   :  { %168 = dma.done.wait [#allocation5], 16  }
 0x1c7   :  { %169 = vsyncadd [#allocation5], 4294967280 }
 0x1c8   :  { %102 = vsyncpa [#allocation3], 1 }
 0x1c9   :  { %103 = vsyncpa [#allocation5], 1 }

</bundles_post_ra>
